<compile_context>
chip_gen: v7x
topology: tpu7x:2x2x1
jax: 0.10.0
libtpu: 0.0.40
codegen_flags: <defaults>
</compile_context>

<pallas_src>
import math
from functools import partial

import jax
import jax.numpy as jnp
from jax.experimental import pallas as pl
from jax.experimental.pallas import tpu as pltpu

IN_FEATURES = 28 * 28          # 784
HIDDEN = 128
OUT_FEATURES = 10
DEFAULT_TILE_B = 4096          # amortizes per-step overhead; fits v7x 64 MiB/TC


def _cdiv(a, b):
    return -(-a // b)


def _round_up(n, m):
    return ((n + m - 1) // m) * m


def _vmem_limit_bytes(tb, x_itemsize):
    """Scoped-VMEM budget: double-buffered x & out tiles + resident weights."""
    x_bytes = 2 * tb * 896 * x_itemsize     # 784 lanes pad to 896 in VMEM
    out_bytes = 2 * tb * 128 * 4            # 10 lanes pad to 128, f32
    w_bytes = 2 * (IN_FEATURES * HIDDEN * 2 + HIDDEN * 128 * 2 + 2 * 8 * 128 * 4)
    budget = int(1.25 * (x_bytes + out_bytes + w_bytes)) + (2 << 20)
    # floor at the v5e default (harmless), cap below the v7x 64 MiB/TC physical VMEM
    return min(max(budget, 16 * 1024 * 1024), 56 * 1024 * 1024)


def mlp_kernel(x_ref, w1_ref, b1_ref, w2_ref, b2_ref, o_ref):
    # Cast the streamed x tile to bf16 in-kernel (no wrapper-side HBM copy).
    x = x_ref[...].astype(jnp.bfloat16)
    # fc1: (TB, 784)bf16 @ (784, 128)bf16 -> f32 acc, + bias, ReLU (f32 epilogue)
    h = jnp.dot(x, w1_ref[...], preferred_element_type=jnp.float32)
    h = jnp.maximum(h + b1_ref[...], 0.0)
    # fc2: bf16 matmul to the 10 real output columns, f32 acc + f32 bias.
    h = h.astype(jnp.bfloat16)
    logits = jnp.dot(h, w2_ref[...], preferred_element_type=jnp.float32) + b2_ref[...]
    # numerically stable log_softmax over the 10 real columns, all in f32
    m = jnp.max(logits, axis=-1, keepdims=True)
    shifted = logits - m
    lse = jnp.log(jnp.sum(jnp.exp(shifted), axis=-1, keepdims=True))
    o_ref[...] = shifted - lse


@partial(jax.jit, static_argnames=("tile_b",))
def net_forward(x, w1, b1, w2, b2, *, tile_b=DEFAULT_TILE_B):
    """x: (B, 1, 28, 28) or anything flattening to (-1, 784). Returns (B, 10) f32."""
    x2d = x.reshape(-1, IN_FEATURES)
    B = x2d.shape[0]

    # Pick the number of batch tiles:
    #  - at least ceil(B / tile_b),
    #  - at least 2 when B is big enough (keeps both v7x TensorCores busy),
    # then a tile size that's a multiple of 8 sublanes.
    n_tiles = max(1, _cdiv(B, tile_b))
    if n_tiles == 1 and B >= 16:
        n_tiles = 2
    tb = _round_up(_cdiv(B, n_tiles), 8)
    Bp = _round_up(B, tb)
    if Bp != B:
        # zero rows are numerically benign through relu/exp/log; sliced off below
        x2d = jnp.pad(x2d, ((0, Bp - B), (0, 0)))

    # bf16 resident matmul weights; f32 biases (accuracy tradeoff: bf16 MXU operands).
    w1_bf = w1.astype(jnp.bfloat16)
    b1_f32 = b1.reshape(1, HIDDEN).astype(jnp.float32)
    w2_bf = w2.reshape(HIDDEN, OUT_FEATURES).astype(jnp.bfloat16)
    b2_f32 = b2.reshape(1, OUT_FEATURES).astype(jnp.float32)

    grid = (Bp // tb,)
    out = pl.pallas_call(
        mlp_kernel,
        out_shape=jax.ShapeDtypeStruct((Bp, OUT_FEATURES), jnp.float32),
        grid=grid,
        in_specs=[
            pl.BlockSpec((tb, IN_FEATURES), lambda i: (i, 0)),       # streamed x tiles
            pl.BlockSpec((IN_FEATURES, HIDDEN), lambda i: (0, 0)),   # resident w1
            pl.BlockSpec((1, HIDDEN), lambda i: (0, 0)),             # resident b1
            pl.BlockSpec((HIDDEN, OUT_FEATURES), lambda i: (0, 0)),  # resident w2
            pl.BlockSpec((1, OUT_FEATURES), lambda i: (0, 0)),       # resident b2
        ],
        out_specs=pl.BlockSpec((tb, OUT_FEATURES), lambda i: (i, 0)),
        compiler_params=pltpu.CompilerParams(
            dimension_semantics=("parallel",),
            vmem_limit_bytes=_vmem_limit_bytes(tb, x2d.dtype.itemsize)),
    )(x2d, w1_bf, b1_f32, w2_bf, b2_f32)

    return out[:B]


def init_params(key):
    """Deterministic init matching PyTorch nn.Linear default U(-1/sqrt(fan_in), +)."""
    k1, k2, k3, k4 = jax.random.split(key, 4)
    bound1 = 1.0 / math.sqrt(IN_FEATURES)
    w1 = jax.random.uniform(k1, (IN_FEATURES, HIDDEN), jnp.float32, -bound1, bound1)
    b1 = jax.random.uniform(k2, (1, HIDDEN), jnp.float32, -bound1, bound1)
    bound2 = 1.0 / math.sqrt(HIDDEN)
    w2 = jax.random.uniform(k3, (HIDDEN, OUT_FEATURES), jnp.float32, -bound2, bound2)
    b2 = jax.random.uniform(k4, (1, OUT_FEATURES), jnp.float32, -bound2, bound2)
    return w1, b1, w2, b2


def net_forward_ref(x, w1, b1, w2, b2):
    """Pure-JAX f32 reference (matches the PyTorch forward)."""
    x2d = x.reshape(-1, IN_FEATURES).astype(jnp.float32)
    h = jnp.maximum(x2d @ w1 + b1, 0.0)
    logits = h @ w2 + b2
    return jax.nn.log_softmax(logits, axis=1)


def _check(x, params):
    out = jax.block_until_ready(net_forward(x, *params))
    B = x.reshape(-1, IN_FEATURES).shape[0]
    assert out.shape == (B, OUT_FEATURES), out.shape
    # log_softmax rows must sum (in prob space) to ~1
    row_sums = jnp.sum(jnp.exp(out), axis=1)
    assert bool(jnp.all(jnp.abs(row_sums - 1.0) < 1e-3)), row_sums
    # compare against the f32 reference (bf16 matmuls -> loose tolerance)
    ref = net_forward_ref(x, *params)
    err = jnp.max(jnp.abs(out - ref))
    assert bool(err < 0.05), err


if __name__ == "__main__":
    key = jax.random.PRNGKey(0)
    kx, kx2, kp = jax.random.split(key, 3)
    params = init_params(kp)

    # Small batch of MNIST-shaped inputs (B, 1, 28, 28), NCHW like PyTorch.
    x = jax.random.normal(kx, (2, 1, 28, 28), jnp.float32)
    _check(x, params)

    # Odd batch size: exercises the 2-tile split + zero-padded batch tail path.
    x2 = jax.random.normal(kx2, (37, 1, 28, 28), jnp.float32)
    _check(x2, params)

    print("KERNEL_OK")
</pallas_src>

<mosaic_0001>
module attributes {stable_mosaic.version = 11 : i64} {
  func.func @mlp_kernel(%arg0: i32, %arg1: memref<8x784xf32, #tpu.memory_space<vmem>>, %arg2: memref<784x128xbf16, #tpu.memory_space<vmem>>, %arg3: memref<1x128xf32, #tpu.memory_space<vmem>>, %arg4: memref<128x10xbf16, #tpu.memory_space<vmem>>, %arg5: memref<1x10xf32, #tpu.memory_space<vmem>>, %arg6: memref<8x10xf32, #tpu.memory_space<vmem>>) attributes {dimension_semantics = [#tpu.dimension_semantics<parallel>], iteration_bounds = array<i64: 1>, scalar_prefetch = 0 : i64, scratch_operands = 0 : i64, tpu.core_type = #tpu.core_type<tc>, window_params = [{transform_indices = @transform_0, window_bounds = array<i64: 8, 784>}, {pipeline_mode = #tpu.pipeline_mode<synchronous>, transform_indices = @transform_1, window_bounds = array<i64: 784, 128>}, {pipeline_mode = #tpu.pipeline_mode<synchronous>, transform_indices = @transform_2, window_bounds = array<i64: 1, 128>}, {pipeline_mode = #tpu.pipeline_mode<synchronous>, transform_indices = @transform_3, window_bounds = array<i64: 128, 10>}, {pipeline_mode = #tpu.pipeline_mode<synchronous>, transform_indices = @transform_4, window_bounds = array<i64: 1, 10>}, {transform_indices = @transform_5, window_bounds = array<i64: 8, 10>}]} {
    %c0 = arith.constant 0 : index
    %c0_0 = arith.constant 0 : index
    %0 = vector.load %arg1[%c0, %c0_0] : memref<8x784xf32, #tpu.memory_space<vmem>>, vector<8x784xf32>
    %1 = arith.truncf %0 : vector<8x784xf32> to vector<8x784xbf16>
    %c0_1 = arith.constant 0 : index
    %c0_2 = arith.constant 0 : index
    %2 = vector.load %arg2[%c0_1, %c0_2] : memref<784x128xbf16, #tpu.memory_space<vmem>>, vector<784x128xbf16>
    %cst = arith.constant dense<0.000000e+00> : vector<8x128xf32>
    %3 = tpu.matmul %1, %2, %cst {dimension_numbers = #tpu.dot_dimension_numbers<[1], [0], [0], [1], [0, 0, 1, 1], [], []>} : vector<8x784xbf16>, vector<784x128xbf16>, vector<8x128xf32> -> vector<8x128xf32>
    %c0_3 = arith.constant 0 : index
    %c0_4 = arith.constant 0 : index
    %4 = vector.load %arg3[%c0_3, %c0_4] : memref<1x128xf32, #tpu.memory_space<vmem>>, vector<1x128xf32>
    %5 = vector.broadcast %4 : vector<1x128xf32> to vector<8x128xf32>
    %6 = arith.addf %3, %5 : vector<8x128xf32>
    %cst_5 = arith.constant 0.000000e+00 : f32
    %7 = vector.broadcast %cst_5 : f32 to vector<8x128xf32>
    %8 = arith.maximumf %6, %7 : vector<8x128xf32>
    %9 = arith.truncf %8 : vector<8x128xf32> to vector<8x128xbf16>
    %c0_6 = arith.constant 0 : index
    %c0_7 = arith.constant 0 : index
    %10 = vector.load %arg4[%c0_6, %c0_7] : memref<128x10xbf16, #tpu.memory_space<vmem>>, vector<128x10xbf16>
    %cst_8 = arith.constant dense<0.000000e+00> : vector<8x10xf32>
    %11 = tpu.matmul %9, %10, %cst_8 {dimension_numbers = #tpu.dot_dimension_numbers<[1], [0], [0], [1], [0, 0, 1, 1], [], []>} : vector<8x128xbf16>, vector<128x10xbf16>, vector<8x10xf32> -> vector<8x10xf32>
    %c0_9 = arith.constant 0 : index
    %c0_10 = arith.constant 0 : index
    %12 = vector.load %arg5[%c0_9, %c0_10] : memref<1x10xf32, #tpu.memory_space<vmem>>, vector<1x10xf32>
    %13 = vector.broadcast %12 : vector<1x10xf32> to vector<8x10xf32>
    %14 = arith.addf %11, %13 : vector<8x10xf32>
    %cst_11 = arith.constant dense<0xFF800000> : vector<8xf32>
    %15 = vector.multi_reduction <maximumf>, %14, %cst_11 [1] : vector<8x10xf32> to vector<8xf32>
    %16 = vector.shape_cast %15 : vector<8xf32> to vector<8x1xf32>
    %17 = vector.broadcast %16 : vector<8x1xf32> to vector<8x10xf32>
    %18 = arith.subf %14, %17 : vector<8x10xf32>
    %19 = math.exp %18 : vector<8x10xf32>
    %cst_12 = arith.constant dense<0.000000e+00> : vector<8xf32>
    %20 = vector.multi_reduction <add>, %19, %cst_12 [1] : vector<8x10xf32> to vector<8xf32>
    %21 = vector.shape_cast %20 : vector<8xf32> to vector<8x1xf32>
    %22 = math.log %21 : vector<8x1xf32>
    %23 = vector.broadcast %22 : vector<8x1xf32> to vector<8x10xf32>
    %24 = arith.subf %18, %23 : vector<8x10xf32>
    %c0_13 = arith.constant 0 : index
    %c0_14 = arith.constant 0 : index
    %25 = vector.load %arg6[%c0_13, %c0_14] : memref<8x10xf32, #tpu.memory_space<vmem>>, vector<8x10xf32>
    tpu.vector_store %arg6[%c0_13, %c0_14], %24 {strides = array<i32>} : memref<8x10xf32, #tpu.memory_space<vmem>>, vector<8x10xf32>,
    return
  }
  func.func @transform_0(%arg0: i32) -> (i32, i32) {
    %c0_i32 = arith.constant 0 : i32
    %c0_i32_0 = arith.constant 0 : i32
    return %arg0, %c0_i32 : i32, i32
  }
  func.func @transform_1(%arg0: i32) -> (i32, i32) {
    %c0_i32 = arith.constant 0 : i32
    %c0_i32_0 = arith.constant 0 : i32
    %c0_i32_1 = arith.constant 0 : i32
    return %c0_i32, %c0_i32_0 : i32, i32
  }
  func.func @transform_2(%arg0: i32) -> (i32, i32) {
    %c0_i32 = arith.constant 0 : i32
    %c0_i32_0 = arith.constant 0 : i32
    %c0_i32_1 = arith.constant 0 : i32
    return %c0_i32, %c0_i32_0 : i32, i32
  }
  func.func @transform_3(%arg0: i32) -> (i32, i32) {
    %c0_i32 = arith.constant 0 : i32
    %c0_i32_0 = arith.constant 0 : i32
    %c0_i32_1 = arith.constant 0 : i32
    return %c0_i32, %c0_i32_0 : i32, i32
  }
  func.func @transform_4(%arg0: i32) -> (i32, i32) {
    %c0_i32 = arith.constant 0 : i32
    %c0_i32_0 = arith.constant 0 : i32
    %c0_i32_1 = arith.constant 0 : i32
    return %c0_i32, %c0_i32_0 : i32, i32
  }
  func.func @transform_5(%arg0: i32) -> (i32, i32) {
    %c0_i32 = arith.constant 0 : i32
    %c0_i32_0 = arith.constant 0 : i32
    return %arg0, %c0_i32 : i32, i32
  }
}

</mosaic_0001>

<bundles_post_ra>
// kernel: net_forward.1
= control target key start
LH: loop header
LB: loop body
LE: loop exit
PB: predicated region body
PF: predicated region fallthrough
CT: control target
= control target key end

     0   :  { %v955_v44 = vmov 0.0   ;;  %vm956_vm0 = vmmov 0   ;;  %vm434_vm1 = vcmask 130048   ;;  %vm711_vm2 = vcmask 80896   ;;  %s1204_s1 = inlined_call_operand.vmem [shape: bf16[784,128], index: 1, kind: input, shape index: {}]   ;;  %s1205_s0 = inlined_call_operand.vmem [shape: f32[8,784], index: 0, kind: input, shape index: {}]   ;;  %s1206_s3 = inlined_call_operand.vmem [shape: bf16[128,10], index: 3, kind: input, shape index: {}]   ;;  %s1207_s2 = inlined_call_operand.vmem [shape: f32[1,128], index: 2, kind: input, shape index: {}]   ;;  %s1208_s4 = inlined_call_operand.vmem [shape: f32[1,10], index: 4, kind: input, shape index: {}]   ;;  %s1209_s5 = inlined_call_operand.vmem [shape: f32[8,10], index: 5, kind: output, shape index: {}]  }
   0x1   :  { %v894_v0 = vld [vmem:[%s1204_s1 + $0x40] sm:$0xff]   ;;  %v898_v4 = vld [vmem:[%s1204_s1 + $0x48] sm:$0xff]   ;;  %v902_v8 = vld [vmem:[%s1204_s1 + $0x50] sm:$0xff]  }
   0x2   :  { %v895_v1 = vld [vmem:[%s1204_s1] sm:$0xff]   ;;  %789 = vmatprep.subr.bf16.mxu0 %v894_v0  ;;  %v899_v5 = vld [vmem:[%s1204_s1 + $0x8] sm:$0xff]   ;;  %v903_v9 = vld [vmem:[%s1204_s1 + $0x10] sm:$0xff]  }
   0x3   :  { %v896_v2 = vld [vmem:[%s1204_s1 + $0xc0] sm:$0xff]   ;;  %790 = vmatpush3.bf16.msra.mxu0 %v895_v1  ;;  %v900_v6 = vld [vmem:[%s1204_s1 + $0xc8] sm:$0xff]   ;;  %v904_v10 = vld [vmem:[%s1204_s1 + $0xd0] sm:$0xff]  }
   0x4   :  { %v897_v3 = vld [vmem:[%s1204_s1 + $0x80] sm:$0xff]   ;;  %811 = vmatprep.subr.bf16.mxu1 %v896_v2  ;;  %791 = vmatprep.subr.bf16.mxu0 %v898_v4  ;;  %v901_v7 = vld [vmem:[%s1204_s1 + $0x88] sm:$0xff]   ;;  %v905_v11 = vld [vmem:[%s1204_s1 + $0x90] sm:$0xff]  }
   0x5   :  { %812 = vmatpush3.bf16.msra.mxu1 %v897_v3  ;;  %v906_v12 = vld [vmem:[%s1204_s1 + $0x58] sm:$0xff]   ;;  %v910_v16 = vld [vmem:[%s1204_s1 + $0x60] sm:$0xff]   ;;  %v914_v20 = vld [vmem:[%s1204_s1 + $0x68] sm:$0xff]  }
   0x6   :  { %813 = vmatprep.subr.bf16.mxu1 %v900_v6  ;;  %v907_v13 = vld [vmem:[%s1204_s1 + $0x18] sm:$0xff]   ;;  %v911_v17 = vld [vmem:[%s1204_s1 + $0x20] sm:$0xff]   ;;  %v915_v21 = vld [vmem:[%s1204_s1 + $0x28] sm:$0xff]  }
   0x7   :  { %792 = vmatpush3.bf16.msra.mxu0 %v899_v5  ;;  %v908_v14 = vld [vmem:[%s1204_s1 + $0xd8] sm:$0xff]   ;;  %v912_v18 = vld [vmem:[%s1204_s1 + $0xe0] sm:$0xff]   ;;  %v916_v22 = vld [vmem:[%s1204_s1 + $0xe8] sm:$0xff]  }
   0x8   :  { %793 = vmatprep.subr.bf16.mxu0 %v902_v8  ;;  %v909_v15 = vld [vmem:[%s1204_s1 + $0x98] sm:$0xff]   ;;  %v913_v19 = vld [vmem:[%s1204_s1 + $0xa0] sm:$0xff]   ;;  %v917_v23 = vld [vmem:[%s1204_s1 + $0xa8] sm:$0xff]  }
   0x9   :  { %814 = vmatpush3.bf16.msra.mxu1 %v901_v7  ;;  %v918_v24 = vld [vmem:[%s1204_s1 + $0x70] sm:$0xff]   ;;  %v922_v28 = vld [vmem:[%s1204_s1 + $0x78] sm:$0xff]   ;;  %v22_v31 = vld [vmem:[%s1205_s0 + $0x8] sm:$0xff] }
   0xa   :  { %815 = vmatprep.subr.bf16.mxu1 %v904_v10  ;;  %v919_v25 = vld [vmem:[%s1204_s1 + $0x30] sm:$0xff]   ;;  %v923_v29 = vld [vmem:[%s1204_s1 + $0x38] sm:$0xff]   ;;  %v29_v32 = vpack.c.bf16 %v22_v31, %v22_v31  ;;  %v21_v34 = vld [vmem:[%s1205_s0] sm:$0xff] }
   0xb   :  { %794 = vmatpush3.bf16.msra.mxu0 %v903_v9  ;;  %v920_v26 = vld [vmem:[%s1204_s1 + $0xf0] sm:$0xff]   ;;  %v924_v30 = vld [vmem:[%s1204_s1 + $0xf8] sm:$0xff]   ;;  %v28_v35 = vpack.c.bf16 %v21_v34, %v21_v34  ;;  %v926_v36 = vld [vmem:[%s1204_s1 + $0x140] sm:$0xff]  }
   0xc   :  { %795 = vmatprep.subr.bf16.mxu0 %v906_v12  ;;  %v921_v27 = vld [vmem:[%s1204_s1 + $0xb0] sm:$0xff]   ;;  %v925_v33 = vld [vmem:[%s1204_s1 + $0xb8] sm:$0xff]   ;;  %470 = vmatprep.mubr.bf16.mxu0 %v29_v32  ;;  %v927_v39 = vld [vmem:[%s1204_s1 + $0x100] sm:$0xff]  }
   0xd   :  { %816 = vmatpush3.bf16.msra.mxu1 %v905_v11  ;;  %v24_v37 = vld [vmem:[%s1205_s0 + $0x18] sm:$0xff]  ;;  %v23_v40 = vld [vmem:[%s1205_s0 + $0x10] sm:$0xff]  ;;  %v928_v42 = vld [vmem:[%s1204_s1 + $0x148] sm:$0xff]  }
   0xe   :  { %817 = vmatprep.subr.bf16.mxu1 %v908_v14  ;;  %v31_v38 = vpack.c.bf16 %v24_v37, %v24_v37  ;;  %v30_v41 = vpack.c.bf16 %v23_v40, %v23_v40  ;;  %v929_v43 = vld [vmem:[%s1204_s1 + $0x108] sm:$0xff]   ;;  %v930_v45 = vld [vmem:[%s1204_s1 + $0x150] sm:$0xff]   ;;  %v932_v47 = vld [vmem:[%s1204_s1 + $0x158] sm:$0xff]  }
   0xf   :  { %796 = vmatpush3.bf16.msra.mxu0 %v907_v13  ;;  %v931_v46 = vld [vmem:[%s1204_s1 + $0x110] sm:$0xff]   ;;  %v933_v48 = vld [vmem:[%s1204_s1 + $0x118] sm:$0xff]   ;;  %v934_v49 = vld [vmem:[%s1204_s1 + $0x160] sm:$0xff]  }
  0x10   :  { %797 = vmatprep.subr.bf16.mxu0 %v910_v16  ;;  %510 = vmatprep.mubr.bf16.mxu1 %v31_v38  ;;  %v935_v50 = vld [vmem:[%s1204_s1 + $0x120] sm:$0xff]   ;;  %v936_v51 = vld [vmem:[%s1204_s1 + $0x168] sm:$0xff]   ;;  %v27_v55 = vld [vmem:[%s1205_s0 + $0x30] sm:$0xff] }
  0x11   :  { %818 = vmatpush3.bf16.msra.mxu1 %v909_v15  ;;  %v942_v52 = vld [vmem:[%s1204_s1 + $0x180] sm:$0xff]   ;;  %v26_v53 = vld [vmem:[%s1205_s0 + $0x28] sm:$0xff]  ;;  %v34_v57 = vpack.c.bf16 %v27_v55, %v27_v55  ;;  %v938_v58 = vld [vmem:[%s1204_s1 + $0x170] sm:$0xff]  }
  0x12   :  { %819 = vmatprep.subr.bf16.mxu1 %v912_v18  ;;  %v33_v54 = vpack.c.bf16 %v26_v53, %v26_v53  ;;  %v937_v56 = vld [vmem:[%s1204_s1 + $0x128] sm:$0xff]   ;;  %v939_v59 = vld [vmem:[%s1204_s1 + $0x130] sm:$0xff]   ;;  %v940_v60 = vld [vmem:[%s1204_s1 + $0x178] sm:$0xff]  }
  0x13   :  { %798 = vmatpush3.bf16.msra.mxu0 %v911_v17  ;;  %v941_v61 = vld [vmem:[%s1204_s1 + $0x138] sm:$0xff]   ;;  %v25_v62 = vld [vmem:[%s1205_s0 + $0x20] sm:$0xff]  ;;  %v944_v1 = vld [vmem:[%s1206_s3 + $0x8] sm:$0xff]  }
  0x14   :  { %799 = vmatprep.subr.bf16.mxu0 %v914_v20  ;;  %v32_v63 = vpack.c.bf16 %v25_v62, %v25_v62  ;;  %v943_v0 = vld [vmem:[%s1206_s3] sm:$0xff]   ;;  %v945_v2 = vld [vmem:[%s1206_s3 + $0x10] sm:$0xff]   ;;  %v946_v3 = vld [vmem:[%s1206_s3 + $0x18] sm:$0xff]  }
  0x15   :  { %820 = vmatpush3.bf16.msra.mxu1 %v913_v19  ;;  %v947_v4 = vld [vmem:[%s1206_s3 + $0x20] sm:$0xff]   ;;  %v948_v5 = vld [vmem:[%s1206_s3 + $0x28] sm:$0xff]   ;;  %v949_v6 = vld [vmem:[%s1206_s3 + $0x30] sm:$0xff]  }
  0x16   :  { %821 = vmatprep.subr.bf16.mxu1 %v916_v22  ;;  %v950_v7 = vld [vmem:[%s1206_s3 + $0x38] sm:$0xff]   ;;  %v729_v9 = vld [vmem:[%s1207_s2] ss:$0 sm:$0xff] }
  0x17   :  { %800 = vmatpush3.bf16.msra.mxu0 %v915_v21  ;;  %v780_v34 = vld [vmem:[%s1208_s4] ss:$0 sm:$0xff] }
  0x18   :  { %801 = vmatprep.subr.bf16.mxu0 %v918_v24 }
  0x19   :  { %822 = vmatpush3.bf16.msra.mxu1 %v917_v23 }
  0x1a   :  { %823 = vmatprep.subr.bf16.mxu1 %v920_v26 }
  0x1b   :  { %802 = vmatpush3.bf16.msra.mxu0 %v919_v25 }
  0x1c   :  { %803 = vmatprep.subr.bf16.mxu0 %v922_v28 }
  0x1d   :  { %824 = vmatpush3.bf16.msra.mxu1 %v921_v27 }
  0x1e   :  { %825 = vmatprep.subr.bf16.mxu1 %v924_v30 }
  0x1f   :  { %804 = vmatpush3.bf16.msra.mxu0 %v923_v29 }
  0x20   :  { %833 = vmatprep.subr.bf16.mxu0 %v926_v36 }
  0x21   :  { %826 = vmatpush3.bf16.msra.mxu1 %v925_v33 }
  0x22   :  { %471 = vmatmul.mubr.bf16.vlgmr.msra.gmra.mrb[0].mxu0 %v28_v35  ;;  %866 = vmatprep.subr.bf16.mxu1 %v955_v44 }
  0x23   :  { %834 = vmatpush3.bf16.msra.mxu0 %v927_v39  ;;  %550 = vmatprep.mubr.bf16.mxu0 %v33_v54 }
  0x24   :  { %511 = vmatmul.mubr.bf16.vlgmr.msra.gmra.mrb[0].mxu1 %v30_v41  ;;  %835 = vmatprep.subr.bf16.mxu0 %v928_v42 }
  0x25   :  { %868 = vmatprep.mubr.msk.bf16.mxu1 %vm956_vm0, %v955_v44  ;;  %867 = vmatpush3.bf16.msra.mxu1 %v942_v52 }
  0x26   :  { %872 = vmatprep.subr.bf16.mxu1 %v955_v44 }
  0x27   :  { %836 = vmatpush3.bf16.msra.mxu0 %v929_v43 }
  0x28   :  { %837 = vmatprep.subr.bf16.mxu0 %v930_v45 }
  0x2b   :  { %838 = vmatpush3.bf16.msra.mxu0 %v931_v46 }
  0x2c   :  { %839 = vmatprep.subr.bf16.mxu0 %v932_v47  ;;  %869 = vmatmul.mubr.msk.bf16.vlgmr.msra.gmra.mrb[4].mxu1 %vm434_vm1, %v34_v57 }
  0x2d   :  { %888 = vmatprep.mubr.msk.bf16.mxu1 %vm956_vm0, %v955_v44  ;;  %873 = vmatpush3.bf16.msra.mxu1 %v943_v0 }
  0x2e   :  { %874 = vmatprep.subr.bf16.mxu1 %v955_v44 }
  0x2f   :  { %840 = vmatpush3.bf16.msra.mxu0 %v933_v48 }
  0x30   :  { %841 = vmatprep.subr.bf16.mxu0 %v934_v49 }
  0x31   :  { %875 = vmatpush3.bf16.msra.mxu1 %v944_v1 }
  0x32   :  { %876 = vmatprep.subr.bf16.mxu1 %v955_v44 }
  0x33   :  { %842 = vmatpush3.bf16.msra.mxu0 %v935_v50 }
  0x34   :  { %843 = vmatprep.subr.bf16.mxu0 %v936_v51 }
  0x35   :  { %877 = vmatpush3.bf16.msra.mxu1 %v945_v2 }
  0x36   :  { %878 = vmatprep.subr.bf16.mxu1 %v955_v44 }
  0x37   :  { %844 = vmatpush3.bf16.msra.mxu0 %v937_v56 }
  0x38   :  { %845 = vmatprep.subr.bf16.mxu0 %v938_v58 }
  0x39   :  { %879 = vmatpush3.bf16.msra.mxu1 %v946_v3 }
  0x3a   :  { %880 = vmatprep.subr.bf16.mxu1 %v955_v44 }
  0x3b   :  { %846 = vmatpush3.bf16.msra.mxu0 %v939_v59 }
  0x3c   :  { %847 = vmatprep.subr.bf16.mxu0 %v940_v60 }
  0x3d   :  { %881 = vmatpush3.bf16.msra.mxu1 %v947_v4 }
  0x3e   :  { %882 = vmatprep.subr.bf16.mxu1 %v955_v44 }
  0x3f   :  { %848 = vmatpush3.bf16.msra.mxu0 %v941_v61 }
  0x41   :  { %883 = vmatpush3.bf16.msra.mxu1 %v948_v5 }
  0x42   :  { %551 = vmatmul.mubr.bf16.vlgmr.msra.gmra.mrb[4].mxu0 %v32_v63  ;;  %884 = vmatprep.subr.bf16.mxu1 %v955_v44 }
  0x45   :  { %885 = vmatpush3.bf16.msra.mxu1 %v949_v6 }
  0x46   :  { %886 = vmatprep.subr.bf16.mxu1 %v955_v44 }
  0x49   :  { %887 = vmatpush3.bf16.msra.mxu1 %v950_v7 }
  0xf5   :  { %v805_v8 = vpop.f32.mrb[0].mxu0 }
  0xf6   :  { %v806_v10 = vpop.f32.mrb[1].mxu0 }
  0xf7   :  { %v807_v11 = vadd.f32 %v806_v10, %v805_v8  ;;  %v808_v12 = vpop.f32.mrb[2].mxu0  ;;  %v827_v13 = vpop.f32.mrb[0].mxu1 }
  0xf8   :  { %v809_v14 = vpop.f32.mrb[3].mxu0  ;;  %v828_v16 = vpop.f32.mrb[1].mxu1 }
  0xf9   :  { %v473_v15 = vadd.f32 %v807_v11, %v729_v9  ;;  %v829_v17 = vadd.f32 %v828_v16, %v827_v13  ;;  %v830_v18 = vpop.f32.mrb[2].mxu1 }
  0xfa   :  { %v831_v19 = vpop.f32.mrb[3].mxu1 }
  0xfb   :  { %v513_v20 = vadd.f32 %v829_v17, %v473_v15 }
  0xff   :  { %v592_v21 = vpop.f32.mrb[4].mxu1 }
 0x100   :  { %v870_v22 = vpop.f32.mrb[5].mxu1 }
 0x101   :  { %v595_v23 = vpop.f32.mrb[6].mxu1 }
 0x102   :  { %v871_v24 = vpop.f32.mrb[7].mxu1 }
 0x115   :  { %v849_v25 = vpop.f32.mrb[4].mxu0 }
 0x116   :  { %v850_v26 = vpop.f32.mrb[5].mxu0 }
 0x117   :  { %v851_v27 = vadd.f32 %v850_v26, %v849_v25  ;;  %v852_v28 = vpop.f32.mrb[6].mxu0 }
 0x118   :  { %v853_v29 = vpop.f32.mrb[7].mxu0 }
 0x119   :  { %v553_v30 = vadd.f32 %v851_v27, %v513_v20 }
 0x11b   :  { %v593_v31 = vadd.f32 %v592_v21, %v553_v30 }
 0x11d   :  { %v598_v32 = vmax.f32 %v593_v31, 0.0 }
 0x11f   :  { %v599_v33 = vpack.c.bf16 %v598_v32, %v598_v32 }
 0x121   :  { %889 = vmatmul.mubr.bf16.vlgmr.msra.gmra.mrb[8].mxu1 %v599_v33 }
 0x1f4   :  { %v705_v35 = vpop.f32.mrb[8].mxu1 }
 0x1f5   :  { %v706_v36 = vadd.f32 %v780_v34, %v705_v35  ;;  %v890_v37 = vpop.f32.mrb[9].mxu1 }
 0x1f6   :  { %v708_v38 = vpop.f32.mrb[10].mxu1 }
 0x1f7   :  { %v891_v39 = vpop.f32.mrb[11].mxu1  ;;  %v712_v40 = vsel %vm711_vm2, %v706_v36, -inf }
 0x1f8   :  { %713 = vmax.xlane.f32.xlu0 %v712_v40 }
 0x285   :  { %v714_v41 = vpop.xlane.xlu0 %713 }
 0x286   :  { %v715_v42 = vsub.f32 %v706_v36, %v714_v41 }
 0x288   :  { %v716_v43 = vmul.f32 1.442695, %v715_v42 }
 0x28a   :  { %951 = vpow2.f32 %v716_v43 }
 0x294   :  { %v952_v44 = vpop.eup %951 }
 0x295   :  { %v718_v45 = vsel %vm711_vm2, %v952_v44, 0.0 }
 0x296   :  { %719 = vadd.xlane.f32.xlu0 %v718_v45 }
 0x323   :  { %v720_v46 = vpop.xlane.xlu0 %719 }
 0x324   :  { %953 = vlog2.f32 %v720_v46 }
 0x32e   :  { %v954_v47 = vpop.eup %953 }
 0x32f   :  { %v722_v48 = vmul.f32 0.6931472, %v954_v47 }
 0x331   :  { %v723_v49 = vsub.f32 %v715_v42, %v722_v48 }
 0x333   :  { %724 = vst.msk [vmem:[%s1209_s5] sm:$0xff] %vm711_vm2, %v723_v49 }

</bundles_post_ra>
